<compile_context>
chip_gen: v6e
topology: v6e:2x2x1
jax: 0.10.0
libtpu: 0.0.40
codegen_flags: <defaults>
</compile_context>

<pallas_src>
import functools

import jax
import jax.numpy as jnp
from jax.experimental import pallas as pl
from jax.experimental.pallas import tpu as pltpu


def _gated_unit_kernel(x_ref, o_ref, *, use_approx_recip: bool):
    # Compute in f32 (safe on all generations; v5e has no bf16 VPU/EUP path).
    x = x_ref[...].astype(jnp.float32)
    # Numerically stable single-exp formulation of tanh(x)*sigmoid(x):
    #   t = exp(-|x|) in (0, 1]
    #   tanh(x)*sigmoid(x) = (1 - t) * where(x >= 0, 1, -t) / (1 + t*t)
    t = jnp.exp(-jnp.abs(x))                       # 1 EUP push / element
    num = (1.0 - t) * jnp.where(x >= 0, 1.0, -t)
    den = 1.0 + t * t
    if use_approx_recip:
        # EUP approx reciprocal: fine for bf16/f16 outputs (error << cast error).
        y = num * pl.reciprocal(den, approx=True)
    else:
        # Exact divide keeps f32 outputs within 1e-5 of the reference.
        y = num / den
    o_ref[...] = y.astype(o_ref.dtype)


def _choose_width(n: int):
    """Widest lane-dense last dim (multiple of 128) that divides n exactly."""
    for w in (32768, 16384, 8192, 4096, 2048, 1024, 512, 256, 128):
        if n % w == 0:
            return w
    return None


def gated_unit(x: jnp.ndarray) -> jnp.ndarray:
    """Elementwise gated activation: tanh(x) * sigmoid(x). Any float shape/dtype."""
    orig_shape = x.shape
    orig_dtype = x.dtype
    n = x.size
    itemsize = jnp.dtype(orig_dtype).itemsize

    width = _choose_width(n)
    if width is None:
        # Rare fallback for sizes not divisible by 128: small tail pad
        # (< width elements).  Zero pad is benign: tanh(0)*sigmoid(0) = 0.
        # (Could be done with a masked in-kernel tail store instead, but these
        #  shapes are rare for WaveNet activations.)
        width = 1024
        pad = (-n) % width
        x_flat = jnp.pad(x.reshape(-1), (0, pad))
    else:
        pad = 0
        x_flat = x.reshape(-1)

    rows = x_flat.size // width
    x2d = x_flat.reshape(rows, width)

    # dtype-aware sublane multiple: 8 rows for 4-byte, 16 for 2-byte, 32 for 1-byte.
    min_rows = {4: 8, 2: 16, 1: 32}.get(itemsize, 8)

    # ~6 MiB per tile buffer.  With 1 input + 1 output double-buffered this is
    # ~24 MiB of VMEM; vmem_limit_bytes below is raised to 40 MiB, which is
    # within physical VMEM on v5e/v6e (128 MiB) and v7x (64 MiB).
    target_bytes = 6 * 1024 * 1024
    rows_per_block = max(min_rows, target_bytes // (width * itemsize))
    rows_per_block = (rows_per_block // min_rows) * min_rows

    if rows <= min_rows:
        # Tiny input: single block equal to the full array dims (always legal).
        rows_per_block = rows
    else:
        # Keep the grid at >= 2 steps so v7x can shard the row-block loop
        # across its two TensorCores on mid-size tensors.
        max_block = pl.cdiv(pl.cdiv(rows, 2), min_rows) * min_rows
        rows_per_block = max(min(rows_per_block, max_block), min_rows)

    grid = (pl.cdiv(rows, rows_per_block),)

    # Approx reciprocal only when the output cast already dominates error.
    use_approx_recip = orig_dtype in (jnp.bfloat16, jnp.float16)

    kernel = functools.partial(_gated_unit_kernel,
                               use_approx_recip=use_approx_recip)

    cost = pl.CostEstimate(
        flops=8 * n,
        transcendentals=n,
        bytes_accessed=2 * n * itemsize,
    )

    out2d = pl.pallas_call(
        kernel,
        out_shape=jax.ShapeDtypeStruct((rows, width), orig_dtype),
        grid=grid,
        in_specs=[pl.BlockSpec((rows_per_block, width), lambda i: (i, 0))],
        out_specs=pl.BlockSpec((rows_per_block, width), lambda i: (i, 0)),
        compiler_params=pltpu.CompilerParams(
            dimension_semantics=("parallel",),
            vmem_limit_bytes=40 * 1024 * 1024,
        ),
        cost_estimate=cost,
    )(x2d)

    out_flat = out2d.reshape(-1)
    if pad:
        out_flat = out_flat[:n]
    return out_flat.reshape(orig_shape)


if __name__ == "__main__":
    key = jax.random.PRNGKey(0)

    # NCHW input, consistent with PyTorch conv-style tensors in WaveNet.
    x = jax.random.normal(key, (2, 4, 16, 16), dtype=jnp.float32)
    y = gated_unit(x)
    jax.block_until_ready(y)

    y_ref = jnp.tanh(x) * jax.nn.sigmoid(x)
    assert y.shape == x.shape and y.dtype == x.dtype
    assert jnp.allclose(y, y_ref, atol=1e-5, rtol=1e-5)

    # Exercise the non-128-aligned fallback path too.
    x_odd = jax.random.normal(jax.random.PRNGKey(1), (3, 5, 7), dtype=jnp.float32)
    y_odd = gated_unit(x_odd)
    jax.block_until_ready(y_odd)
    y_odd_ref = jnp.tanh(x_odd) * jax.nn.sigmoid(x_odd)
    assert y_odd.shape == x_odd.shape
    assert jnp.allclose(y_odd, y_odd_ref, atol=1e-5, rtol=1e-5)

    # Exercise the bf16 / approx-reciprocal path (looser tolerance: bf16 cast
    # already bounds accuracy).
    x_bf = jax.random.normal(jax.random.PRNGKey(2), (4, 8, 128), dtype=jnp.bfloat16)
    y_bf = gated_unit(x_bf)
    jax.block_until_ready(y_bf)
    x_bf_f32 = x_bf.astype(jnp.float32)
    y_bf_ref = jnp.tanh(x_bf_f32) * jax.nn.sigmoid(x_bf_f32)
    assert y_bf.shape == x_bf.shape and y_bf.dtype == x_bf.dtype
    assert jnp.allclose(y_bf.astype(jnp.float32), y_bf_ref, atol=2e-2, rtol=2e-2)

    print("KERNEL_OK")
</pallas_src>

<mosaic_0001>
module attributes {stable_mosaic.version = 11 : i64} {
  func.func @_gated_unit_kernel(%arg0: i32, %arg1: memref<1x2048xf32, #tpu.memory_space<vmem>>, %arg2: memref<1x2048xf32, #tpu.memory_space<vmem>>) attributes {dimension_semantics = [#tpu.dimension_semantics<parallel>], iteration_bounds = array<i64: 1>, scalar_prefetch = 0 : i64, scratch_operands = 0 : i64, tpu.core_type = #tpu.core_type<tc>, window_params = [{transform_indices = @transform_0, window_bounds = array<i64: 1, 2048>}, {transform_indices = @transform_1, window_bounds = array<i64: 1, 2048>}]} {
    %c0 = arith.constant 0 : index
    %c0_0 = arith.constant 0 : index
    %0 = vector.load %arg1[%c0, %c0_0] : memref<1x2048xf32, #tpu.memory_space<vmem>>, vector<1x2048xf32>
    %1 = math.absf %0 : vector<1x2048xf32>
    %cst = arith.constant 0.000000e+00 : f32
    %2 = vector.broadcast %cst : f32 to vector<1x2048xf32>
    %3 = arith.subf %2, %1 : vector<1x2048xf32>
    %4 = math.exp %3 : vector<1x2048xf32>
    %cst_1 = arith.constant 1.000000e+00 : f32
    %5 = vector.broadcast %cst_1 : f32 to vector<1x2048xf32>
    %6 = arith.subf %5, %4 : vector<1x2048xf32>
    %cst_2 = arith.constant 0.000000e+00 : f32
    %7 = vector.broadcast %cst_2 : f32 to vector<1x2048xf32>
    %8 = arith.cmpf oge, %0, %7 : vector<1x2048xf32>
    %cst_3 = arith.constant 0.000000e+00 : f32
    %9 = vector.broadcast %cst_3 : f32 to vector<1x2048xf32>
    %10 = arith.subf %9, %4 : vector<1x2048xf32>
    %cst_4 = arith.constant 1.000000e+00 : f32
    %11 = vector.broadcast %cst_4 : f32 to vector<1x2048xf32>
    %12 = arith.select %8, %11, %10 : vector<1x2048xi1>, vector<1x2048xf32>
    %13 = arith.mulf %6, %12 : vector<1x2048xf32>
    %14 = arith.mulf %4, %4 : vector<1x2048xf32>
    %cst_5 = arith.constant 1.000000e+00 : f32
    %15 = vector.broadcast %cst_5 : f32 to vector<1x2048xf32>
    %16 = arith.addf %15, %14 : vector<1x2048xf32>
    %17 = arith.divf %13, %16 : vector<1x2048xf32>
    %c0_6 = arith.constant 0 : index
    %c0_7 = arith.constant 0 : index
    %18 = vector.load %arg2[%c0_6, %c0_7] : memref<1x2048xf32, #tpu.memory_space<vmem>>, vector<1x2048xf32>
    tpu.vector_store %arg2[%c0_6, %c0_7], %17 {strides = array<i32>} : memref<1x2048xf32, #tpu.memory_space<vmem>>, vector<1x2048xf32>,
    return
  }
  func.func @transform_0(%arg0: i32) -> (i32, i32) {
    %c0_i32 = arith.constant 0 : i32
    %c0_i32_0 = arith.constant 0 : i32
    return %arg0, %c0_i32 : i32, i32
  }
  func.func @transform_1(%arg0: i32) -> (i32, i32) {
    %c0_i32 = arith.constant 0 : i32
    %c0_i32_0 = arith.constant 0 : i32
    return %arg0, %c0_i32 : i32, i32
  }
}

</mosaic_0001>

<bundles_post_ra>
// kernel: tpu_custom_call.1
= control target key start
LH: loop header
LB: loop body
LE: loop exit
PB: predicated region body
PF: predicated region fallthrough
CT: control target
= control target key end

     0   :  { %6 = vsyncpa [#allocation3], 0  ;;  %s138_s0 = inlined_call_operand.hbm [shape: f32[1,2048], index: 0, kind: input, shape index: {}]   ;;  %s139_s1 = inlined_call_operand.hbm [shape: f32[1,2048], index: 1, kind: output, shape index: {}]  }
   0x1   :  { %7 = vsyncpa [#allocation4], 0  ;;  %s120_s6 = smov [#allocation2]  }
   0x2   :  { %s14_s7 = sshll.u32 %s120_s6, 4  ;;  %s15_s7 = int_to_ptr.vmem [resolvable:$true] %s14_s7 }
   0x3   :  { %s84_s8 = scalar_lea.vmem %s15_s7, 256  ;;  %p89_p1 = scmp.lt.s32.totalorder %s15_s7, %s15_s7 }
   0x4   :  { %p85_p0 = scmp.ne.s32.totalorder %s15_s7, %s84_s8  ;;  %p90_p2 = scmp.lt.s32.totalorder %s84_s8, %s84_s8 }
   0x6   :  { %p91_p3 = por %p90_p2, %p89_p1 }
   0x8   :  { %p92_p4 = pnand %p91_p3, %p85_p0 }
   0xa   :  { %95 = shalt.err (!%p92_p4)
}
   0xb   :  { %17 = dma.hbm_to_vmem [thread:$0]  %s138_s0, 256, %s15_s7, [#allocation3]  }
   0xc   :  { %116 = dma.done.wait [#allocation3], 256  }
   0xd   :  { %117 = vsyncadd [#allocation3], 4294967040  ;;  %v21_v0 = vld [vmem:[#allocation2] sm:$0xff]  ;;  %v22_v1 = vld [vmem:[#allocation2 + $0x8] sm:$0xff]  ;;  %s121_s0 = smov [#allocation5]  }
   0xe   :  { %v23_v2 = vand.u32 2147483647, %v21_v0  ;;  %v24_v3 = vand.u32 2147483647, %v22_v1  ;;  %vm33_vm0 = vcmp.ge.f32.partialorder %v21_v0, 0.0  ;;  %vm34_vm1 = vcmp.ge.f32.partialorder %v22_v1, 0.0 }
   0xf   :  { %s57_s11 = sshll.u32 %s121_s0, 4  ;;  %s58_s11 = int_to_ptr.vmem [resolvable:$true] %s57_s11 }
  0x10   :  { %v25_v4 = vsub.f32 0.0, %v23_v2  ;;  %v26_v5 = vsub.f32 0.0, %v24_v3  ;;  %s96_s12 = scalar_lea.vmem %s58_s11, 256  ;;  %p101_p6 = scmp.lt.s32.totalorder %s58_s11, %s58_s11 }
  0x11   :  { %p97_p5 = scmp.ne.s32.totalorder %s58_s11, %s96_s12  ;;  %p102_p7 = scmp.lt.s32.totalorder %s96_s12, %s96_s12 }
  0x12   :  { %v27_v6 = vmul.f32 1.442695, %v25_v4  ;;  %v29_v7 = vmul.f32 1.442695, %v26_v5 }
  0x13   :  { %p103_p8 = por %p102_p7, %p101_p6 }
  0x14   :  { %68 = vpow2.f32 %v27_v6 }
  0x15   :  { %70 = vpow2.f32 %v29_v7  ;;  %p104_p9 = pnand %p103_p8, %p97_p5 }
  0x21   :  { %v69_v8 = vpop.eup %68 }
  0x22   :  { %v71_v9 = vpop.eup %70  ;;  %v41_v10 = vmul.f32 %v69_v8, %v69_v8  ;;  %v35_v14 = vsub.f32 0.0, %v69_v8  ;;  %v31_v16 = vsub.f32 1.0, %v69_v8 }
  0x23   :  { %v42_v11 = vmul.f32 %v71_v9, %v71_v9  ;;  %v36_v15 = vsub.f32 0.0, %v71_v9  ;;  %v32_v18 = vsub.f32 1.0, %v71_v9 }
  0x24   :  { %v43_v12 = vadd.f32 1.0, %v41_v10  ;;  %v37_v17 = vsel %vm33_vm0, 1.0, %v35_v14 }
  0x25   :  { %v44_v13 = vadd.f32 1.0, %v42_v11  ;;  %v38_v19 = vsel %vm34_vm1, 1.0, %v36_v15  ;;  %v39_v20 = vmul.f32 %v37_v17, %v31_v16 }
  0x26   :  { %72 = vrcp.f32 %v43_v12  ;;  %v40_v21 = vmul.f32 %v38_v19, %v32_v18 }
  0x27   :  { %74 = vrcp.f32 %v44_v13 }
  0x33   :  { %v73_v22 = vpop.eup %72 }
  0x34   :  { %v75_v23 = vpop.eup %74  ;;  %v46_v24 = vmul.f32 %v73_v22, %v39_v20 }
  0x35   :  { %v48_v25 = vmul.f32 %v75_v23, %v40_v21 }
  0x36   :  { %49 = vst [vmem:[#allocation5] sm:$0xff] %v46_v24 }
  0x37   :  { %50 = vst [vmem:[#allocation5 + $0x8] sm:$0xff] %v48_v25 }
  0x38   :  { %107 = shalt.err (!%p104_p9)
}
  0x39   :  { %60 = dma.vmem_to_hbm [thread:$0]  %s58_s11, 256, %s139_s1, [#allocation4]  }
  0x3a   :  { %118 = dma.done.wait [#allocation4], 256  }
  0x3b   :  { %119 = vsyncadd [#allocation4], 4294967040 }
  0x3c   :  { %64 = vsyncpa [#allocation3], 1 }
  0x3d   :  { %65 = vsyncpa [#allocation4], 1 }

</bundles_post_ra>
